<compile_context>
chip_gen: v5e
topology: v5e:2x2
jax: 0.10.0
libtpu: 0.0.40
codegen_flags: <defaults>
</compile_context>

<pallas_src>
import functools

import jax
import jax.numpy as jnp
from jax.experimental import pallas as pl
from jax.experimental.pallas import tpu as pltpu


def _round_up(x: int, m: int) -> int:
    return ((x + m - 1) // m) * m


def _copy_kernel(x_ref, o_ref):
    # Input block extent already equals the cropped extent: straight copy.
    o_ref[...] = x_ref[...]


def _crop_kernel(x_ref, o_ref, *, h_out, w_out):
    # Residual static crop of the (8/128-rounded) input block.
    o_ref[...] = x_ref[:, :h_out, :w_out]


def chomp2d(
    x: jax.Array,
    chomp_size_h: int,
    chomp_size_w: int,
    *,
    vmem_tile_bytes: int = 4 * 1024 * 1024,
) -> jax.Array:
    """Removes `chomp_size_h` rows from the bottom and `chomp_size_w` cols
    from the right of an NCHW tensor, matching Chomp2d.forward."""
    n, c, h, w = x.shape
    if h <= chomp_size_h or w <= chomp_size_w:
        raise ValueError(
            f"Chomp size too large for input tensor shape: {x.shape}"
        )
    h_out = h - chomp_size_h
    w_out = w - chomp_size_w

    nc = n * c
    x3 = x.reshape(nc, h, w)  # free metadata reshape (contiguous)

    # Read only what we keep, rounded up to the (8, 128) register tiling so
    # the block shape stays legal; cap at the full array extent.
    h_blk = h_out if (h_out == h or h_out % 8 == 0) else min(_round_up(h_out, 8), h)
    w_blk = w_out if (w_out == w or w_out % 128 == 0) else min(_round_up(w_out, 128), w)

    itemsize = jnp.dtype(x.dtype).itemsize
    plane_bytes = h_blk * w_blk * itemsize

    # Planes per grid step: target ~vmem_tile_bytes of input per step, keep at
    # least 2 grid steps when possible (v7x: shard across both TensorCores),
    # and snap down to a divisor of nc so there are no partial blocks.
    p_target = max(1, vmem_tile_bytes // max(1, plane_bytes))
    p_cap = max(1, nc // 2) if nc >= 2 else 1
    p = max(1, min(nc, p_target, p_cap))
    while nc % p != 0:
        p -= 1
    grid = (nc // p,)

    needs_crop = (h_blk != h_out) or (w_blk != w_out)
    kernel = (
        functools.partial(_crop_kernel, h_out=h_out, w_out=w_out)
        if needs_crop
        else _copy_kernel
    )

    bytes_accessed = (nc * h_blk * w_blk + nc * h_out * w_out) * itemsize

    out3 = pl.pallas_call(
        kernel,
        out_shape=jax.ShapeDtypeStruct((nc, h_out, w_out), x.dtype),
        grid_spec=pltpu.PrefetchScalarGridSpec(
            num_scalar_prefetch=0,
            grid=grid,
            in_specs=[
                # Only the kept (rounded) sub-plane is DMA'd; last two dims
                # are either multiples of (8, 128) or the full extents.
                pl.BlockSpec((p, h_blk, w_blk), lambda i: (i, 0, 0)),
            ],
            out_specs=pl.BlockSpec((p, h_out, w_out), lambda i: (i, 0, 0)),
        ),
        compiler_params=pltpu.CompilerParams(
            dimension_semantics=("parallel",),
            # Double-buffered (in + out) tiles stay well under this on every
            # generation (v5e default scoped is only 16 MiB).
            vmem_limit_bytes=32 * 1024 * 1024,
        ),
        cost_estimate=pl.CostEstimate(
            flops=0, transcendentals=0, bytes_accessed=bytes_accessed
        ),
    )(x3)

    return out3.reshape(n, c, h_out, w_out)


if __name__ == "__main__":
    key = jax.random.PRNGKey(0)
    # Small NCHW input consistent with the module's usage.
    x = jax.random.normal(key, (2, 4, 16, 16), dtype=jnp.float32)
    chomp_h, chomp_w = 2, 2

    out = chomp2d(x, chomp_h, chomp_w)
    out = jax.block_until_ready(out)

    # Correctness check against plain-JAX slicing semantics.
    ref = x[:, :, :-chomp_h, :-chomp_w]
    assert out.shape == (2, 4, 14, 14), out.shape
    assert out.dtype == x.dtype
    assert jnp.array_equal(out, ref), "mismatch vs reference slice"

    print("KERNEL_OK")
</pallas_src>

<mosaic_0001>
module attributes {stable_mosaic.version = 11 : i64} {
  func.func @_crop_kernel(%arg0: i32, %arg1: memref<4x16x16xf32, #tpu.memory_space<vmem>>, %arg2: memref<4x14x14xf32, #tpu.memory_space<vmem>>) attributes {dimension_semantics = [#tpu.dimension_semantics<parallel>], iteration_bounds = array<i64: 2>, scalar_prefetch = 0 : i64, scratch_operands = 0 : i64, tpu.core_type = #tpu.core_type<tc>, window_params = [{transform_indices = @transform_0, window_bounds = array<i64: 4, 16, 16>}, {transform_indices = @transform_1, window_bounds = array<i64: 4, 14, 14>}]} {
    %c0 = arith.constant 0 : index
    %c0_0 = arith.constant 0 : index
    %c0_1 = arith.constant 0 : index
    %0 = vector.load %arg1[%c0, %c0_0, %c0_1] : memref<4x16x16xf32, #tpu.memory_space<vmem>>, vector<4x14x14xf32>
    %c0_2 = arith.constant 0 : index
    %c0_3 = arith.constant 0 : index
    %c0_4 = arith.constant 0 : index
    %1 = vector.load %arg2[%c0_2, %c0_3, %c0_4] : memref<4x14x14xf32, #tpu.memory_space<vmem>>, vector<4x14x14xf32>
    tpu.vector_store %arg2[%c0_2, %c0_3, %c0_4], %0 {strides = array<i32>} : memref<4x14x14xf32, #tpu.memory_space<vmem>>, vector<4x14x14xf32>,
    return
  }
  func.func @transform_0(%arg0: i32) -> (i32, i32, i32) {
    %c0_i32 = arith.constant 0 : i32
    %c0_i32_0 = arith.constant 0 : i32
    %c0_i32_1 = arith.constant 0 : i32
    return %arg0, %c0_i32, %c0_i32_0 : i32, i32, i32
  }
  func.func @transform_1(%arg0: i32) -> (i32, i32, i32) {
    %c0_i32 = arith.constant 0 : i32
    %c0_i32_0 = arith.constant 0 : i32
    %c0_i32_1 = arith.constant 0 : i32
    return %arg0, %c0_i32, %c0_i32_0 : i32, i32, i32
  }
}

</mosaic_0001>

<bundles_post_ra>
// kernel: tpu_custom_call.1
= control target key start
LH: loop header
LB: loop body
LE: loop exit
PB: predicated region body
PF: predicated region fallthrough
CT: control target
= control target key end

     0   :  { %6 = vsyncpa [#allocation3], 0  ;;  %s467_s0 = inlined_call_operand.hbm [shape: f32[8,16,16], index: 0, kind: input, shape index: {}]   ;;  %s468_s1 = inlined_call_operand.vmem [shape: f32[8,14,14], index: 1, kind: output, shape index: {}]  }
   0x1   :  { %8 = vsyncpa [#allocation3 + $0x1], 0  ;;  %s368_s6 = smov 0   ;;  %s370_s7 = smov 0  }
   0x2   :  { %s372_s8 = smov 0   ;;  %s374_s9 = smov 0  }
   0x3 LB: > { %s231_s10 = sadd.s32 4294967295, %s354_s9   ;;  %s388_s11 = sadd.s32 1, %s354_s9   ;;  %s354_s9 = sphi %s374_s9, %s475_s9   ;;  %s350_s8 = sphi %s372_s8, %s474_s8   ;;  %s346_s7 = sphi %s370_s7, %s473_s7   ;;  %s342_s6 = sphi %s368_s6, %s472_s6  }
   0x4   : > { %s18_s12 = ssub.s32 %s354_s9, %s388_s11  ;;  %s21_s13 = sadd.s32 1, %s350_s8 }
   0x5   : > { %p19_p0 = scmp.eq.s32.totalorder %s18_s12, 0  ;;  %p28_p1 = scmp.ne.s32.totalorder %s350_s8, %s346_s7 }
   0x6   : > { %p29_p2 = scmp.eq.s32.totalorder %s354_s9, 0  ;;  %p34_p3 = scmp.ne.s32.totalorder %s346_s7, %s342_s6 }
   0x7   : > { %s398_s14 = scalar_select %p19_p0, %s350_s8, %s21_s13  }
   0x8   : > { %p400_p4 = por %p29_p2, %p28_p1  ;;  %p35_p5 = scmp.eq.s32.totalorder %s231_s10, 0 }
   0x9   : > { %p255_p6 = scmp.lt.s32.totalorder %s354_s9, 2  ;;  %s84_s17 = sand.u32 1, %s350_s8  }
   0xa   : > { %p407_p7 = por %p35_p5, %p34_p3  ;;  %s235_s18 = sshll.u32 %s84_s17, 6 }
   0xb   : > { %s247_s19 = sshll.u32 %s354_s9, 6  ;;  %s88_s23 = scalar_lea.vmem [#allocation2], %s235_s18 }
   0xc   : > { %s94_s22 = scalar_lea.hbm %s467_s0, %s247_s19  ;;  %s97_s24 = sshll.u32 %s88_s23, 4  ;;  %s98_s24 = int_to_ptr.vmem [resolvable:$true] %s97_s24 }
   0xd   : > { %s95_s25 = sshll.u32 %s94_s22, 4  ;;  %p418_p8 = pnand %p255_p6, %p400_p4  ;;  %s96_s25 = int_to_ptr.hbm [resolvable:$true] %s95_s25 }
   0xe   : > { %p239_p9 = scmp.ge.s32.totalorder %s354_s9, 1  ;;  %s85_s27 = scalar_lea.sflag [#allocation3], %s84_s17 }
   0xf   : > { %s290_s28 = sshra.s32 %s96_s25, 4  ;;  %p294_p11 = pneg %p418_p8  ;;  %s291_s28 = int_to_ptr.hbm [resolvable:$true] %s290_s28 }
  0x10   : > { %s292_s29 = scalar_lea.hbm %s291_s28, 64  ;;  %s297_s3 = scalar_lea.hbm %s467_s0, 128 }
  0x11   : > { %p293_p10 = scmp.ne.s32.totalorder %s291_s28, %s292_s29  ;;  %p298_p0 = scmp.lt.s32.totalorder %s291_s28, %s467_s0 }
  0x12   : > { %p299_p1 = scmp.lt.s32.totalorder %s297_s3, %s292_s29 }
  0x13   : > { %p295_p12 = pnand %p294_p11, %p293_p10 }
  0x14   : > { %p300_p2 = por %p299_p1, %p298_p0 }
  0x15   : > { %p296_p13 = pneg %p295_p12 }
  0x17   : > { %p301_p3 = pnand %p300_p2, %p296_p13 }
  0x19   : > { %304 = shalt.err (!%p301_p3)
}
  0x1a   : > { %s356_s6 = smov 128   ;;  %s357_s12 = smov 8  }
  0x1b   : > { %254 = dma.hbm_to_vmem [thread:$0]  (!%p418_p8), %s96_s25, 1024, %s98_s24, %s85_s27, %s356_s6, %s356_s6, %s357_s12  }
  0x1c   : > { %p105_p4 = scmp.lt.s32.totalorder %s354_s9, 3 }
  0x1e   : > { %p106_p5 = pnand %p239_p9, %p105_p4 }
  0x1f   : > { %s111_s13 = sand.u32 (!%p106_p5), 1, %s346_s7  }
  0x20   : > { %109 = sbr.rel (%p106_p5) target bundleno = 52 (0x34), region = 24  ;;  %s240_s15 = sshll.u32 (!%p106_p5), %s111_s13, 6 }
  0x21   : > { %s112_s17 = scalar_lea.sflag (!%p106_p5), [#allocation3], %s111_s13  ;;  %s115_s18 = scalar_lea.vmem (!%p106_p5), [#allocation2], %s240_s15 }
  0x25   : > { %337 = dma.done.wait (%p407_p7), %s112_s17, 1024  }
  0x26   : > { %339 = vsyncadd (%p407_p7), %s112_s17, 4294966272  ;;  %s241_s19 = sshll.u32 %s231_s10, 2  ;;  %vm152_vm0 = vcmask 113664   ;;  %vm154_vm1 = vcmask 111616   ;;  %v144_v0 = vld [vmem:[%s115_s18] sm:$0xff]  ;;  %v146_v2 = vld [vmem:[%s115_s18 + $0x10] sm:$0xff] }
  0x27   : > { %p138_p6 = scmp.lt.s32.totalorder %s241_s19, 7  ;;  %v145_v1 = vld [vmem:[%s115_s18 + $0x8] sm:$0x3f]  ;;  %v147_v3 = vld [vmem:[%s115_s18 + $0x18] sm:$0x3f]  ;;  %v148_v4 = vld [vmem:[%s115_s18 + $0x20] sm:$0xff] }
  0x28   : > { %v149_v5 = vld [vmem:[%s115_s18 + $0x28] sm:$0x3f]  ;;  %v150_v6 = vld [vmem:[%s115_s18 + $0x30] sm:$0xff]  ;;  %v151_v7 = vld [vmem:[%s115_s18 + $0x38] sm:$0x3f] }
  0x29   : > { %s477_s19 = smov (!%p138_p6, %s241_s19), 7 }
  0x2a   : > { %s248_s20 = sshll.u32 %s477_s19, 4 }
  0x2b   : > { %s142_s23 = scalar_lea.vmem %s468_s1, %s248_s20 }
  0x2c   : > { %153 = vst.msk [vmem:[%s142_s23] sm:$0xff] %vm152_vm0, %v144_v0 }
  0x2d   : > { %155 = vst.msk [vmem:[%s142_s23 + $0x8] sm:$0x3f] %vm154_vm1, %v145_v1 }
  0x2e   : > { %156 = vst.msk [vmem:[%s142_s23 + $0x10] sm:$0xff] %vm152_vm0, %v146_v2 }
  0x2f   : > { %157 = vst.msk [vmem:[%s142_s23 + $0x18] sm:$0x3f] %vm154_vm1, %v147_v3 }
  0x30   : > { %158 = vst.msk [vmem:[%s142_s23 + $0x20] sm:$0xff] %vm152_vm0, %v148_v4 }
  0x31   : > { %159 = vst.msk [vmem:[%s142_s23 + $0x28] sm:$0x3f] %vm154_vm1, %v149_v5 }
  0x32   : > { %160 = vst.msk [vmem:[%s142_s23 + $0x30] sm:$0xff] %vm152_vm0, %v150_v6 }
  0x33   : > { %161 = vst.msk [vmem:[%s142_s23 + $0x38] sm:$0x3f] %vm154_vm1, %v151_v7 }
  0x34 PF: > { %p11_p7 = scmp.ge.s32.totalorder %s388_s11, 4   ;;  %s472_s6 = smov %s346_s7 }
  0x35   : > { %s473_s7 = smov %s350_s8  ;;  %s474_s8 = smov %s398_s14 }
  0x36   : > { %s475_s9 = smov %s388_s11  ;;  %13 = sbr.rel (!%p11_p7) target bundleno = 3 (0x3), region = 64 }
  0x3b   :  { %186 = vsyncpa [#allocation3], 1 }
  0x3c   :  { %188 = vsyncpa [#allocation3 + $0x1], 1 }

</bundles_post_ra>
